<compile_context>
chip_gen: v5e
topology: v5e:2x2
jax: 0.10.0
libtpu: 0.0.40
codegen_flags: <defaults>
</compile_context>

<pallas_src>
import functools

import jax
import jax.numpy as jnp
from jax.experimental import pallas as pl
from jax.experimental.pallas import tpu as pltpu


def _round_up(a: int, b: int) -> int:
    return (a + b - 1) // b * b


def _make_kernel(n_layers, skip_set):
    """Build the Pallas kernel body for a fixed (static) layer/skip structure."""

    def kernel(x_ref, z_ref, *rest):
        # rest = [flattened per-layer param refs ..., o_ref]
        o_ref = rest[-1]
        p = rest[:-1]

        # Activations stay f32 for VPU work; cast to bf16 only at dot inputs.
        y = x_ref[...].astype(jnp.float32)
        z_bf16 = z_ref[...].astype(jnp.bfloat16)   # only ever consumed by the MXU

        idx = 0
        for li in range(n_layers):
            if li in skip_set:
                wy = p[idx][...]          # (hidden_p, hidden_p) bf16
                wz = p[idx + 1][...]      # (skip_dim, hidden_p) bf16
                b = p[idx + 2][...]       # (1, hidden_p) f32 -> broadcasts over rows
                idx += 3
                # cat(y, z) @ [Wy; Wz] == y @ Wy + z @ Wz  (exact matmul split)
                y = (jnp.dot(y.astype(jnp.bfloat16), wy,
                             preferred_element_type=jnp.float32)
                     + jnp.dot(z_bf16, wz, preferred_element_type=jnp.float32)
                     + b)
            else:
                w = p[idx][...]           # bf16
                b = p[idx + 1][...]       # f32
                idx += 2
                y = jnp.dot(y.astype(jnp.bfloat16), w,
                            preferred_element_type=jnp.float32) + b
            y = jnp.maximum(y, 0.0)       # ReLU (f32, VPU)

        o_ref[...] = y.astype(o_ref.dtype)

    return kernel


@functools.partial(jax.jit, static_argnames=("input_skips", "tm"))
def mlp_with_input_skips(x, z, params, *, input_skips=(), tm=2048):
    """Pallas implementation of MLPWithInputSkips.forward.

    Args:
      x: (..., input_dim) input tensor.
      z: (..., skip_dim)  skip tensor (same leading dims as x).
      params: tuple, one entry per layer:
              non-skip layer: (W (dimin, hidden), b (1, hidden))
              skip layer:     (W_y (hidden, hidden), W_z (skip_dim, hidden), b (1, hidden))
      input_skips: static tuple of layer indices that receive the skip concat.
      tm: max row tile (multiple of 8).
    """
    skip_set = frozenset(input_skips)
    # The reference PyTorch module is self-inconsistent if 0 is in input_skips
    # (constructor sizes layer 0 for input_dim but forward would concat z).
    assert 0 not in skip_set, "layer 0 skip is ill-defined in the reference module"

    n_layers = len(params)
    orig_shape = x.shape
    in_dim = x.shape[-1]
    skip_dim = z.shape[-1]
    # NOTE: assumes all layers share one hidden width (true for this module).
    hidden_dim = params[-1][-1].shape[-1]
    hidden_p = _round_up(hidden_dim, 128)    # lane-dense activations / output

    # Stream x / z / out in the caller's dtype (no forced f32 upcast).
    x2 = x.reshape(-1, in_dim)
    z2 = z.reshape(-1, skip_dim)
    N = x2.shape[0]

    # Row tile: multiple of 8, capped at `tm`, shrunk for small N so the row
    # grid has several steps (lets "parallel" shard over v7x's 2 TensorCores).
    # No row padding: grid uses cdiv; Pallas masks the ragged last block.
    tm_eff = min(tm, max(8, _round_up(pl.cdiv(N, 8), 8)))
    grid = (pl.cdiv(N, tm_eff),)

    in_specs = [
        pl.BlockSpec((tm_eff, in_dim), lambda i: (i, 0)),
        pl.BlockSpec((tm_eff, skip_dim), lambda i: (i, 0)),
    ]

    # Lane-pad each layer's output columns / bias to hidden_p and the K rows
    # that consume the (padded) previous hidden activations. Exact rewrite:
    # padded activation columns are always ReLU(0 + 0) = 0.
    flat_params = []
    for li, p in enumerate(params):
        if li in skip_set:
            wy, wz, b = p
            wy = jnp.pad(wy, ((0, hidden_p - wy.shape[0]),
                              (0, hidden_p - wy.shape[1])))
            wz = jnp.pad(wz, ((0, 0), (0, hidden_p - wz.shape[1])))
            b = jnp.pad(b, ((0, 0), (0, hidden_p - b.shape[1])))
            mats = (wy, wz)
        else:
            w, b = p
            k_pad = (hidden_p - w.shape[0]) if li > 0 else 0
            w = jnp.pad(w, ((0, k_pad), (0, hidden_p - w.shape[1])))
            b = jnp.pad(b, ((0, 0), (0, hidden_p - b.shape[1])))
            mats = (w,)
        for m in mats:
            m = m.astype(jnp.bfloat16)           # MXU-native operands
            flat_params.append(m)
            in_specs.append(pl.BlockSpec(m.shape, lambda i: (0, 0)))
        b = b.astype(jnp.float32)                # bias-add stays on the f32 VPU
        flat_params.append(b)
        in_specs.append(pl.BlockSpec(b.shape, lambda i: (0, 0)))

    kernel = _make_kernel(n_layers, skip_set)

    out = pl.pallas_call(
        kernel,
        out_shape=jax.ShapeDtypeStruct((N, hidden_p), x.dtype),
        grid_spec=pltpu.PrefetchScalarGridSpec(
            num_scalar_prefetch=0,
            grid=grid,
            in_specs=in_specs,
            out_specs=pl.BlockSpec((tm_eff, hidden_p), lambda i: (i, 0)),
        ),
        compiler_params=pltpu.CompilerParams(
            dimension_semantics=("parallel",),
            vmem_limit_bytes=32 * 1024 * 1024,
        ),
    )(x2, z2, *flat_params)

    if hidden_p != hidden_dim:
        out = out[:, :hidden_dim]
    return out.reshape(*orig_shape[:-1], hidden_dim)


def _reference(x, z, params, input_skips):
    """Pure-JAX f32 reference mirroring the PyTorch forward (explicit concat)."""
    skip_set = set(input_skips)
    y = x
    for li, p in enumerate(params):
        if li in skip_set:
            wy, wz, b = p
            w = jnp.concatenate([wy, wz], axis=0)
            y = jnp.concatenate([y, z], axis=-1) @ w + b.reshape(-1)
        else:
            w, b = p
            y = y @ w + b.reshape(-1)
        y = jax.nn.relu(y)
    return y


if __name__ == "__main__":
    key = jax.random.PRNGKey(0)

    # Small, module-consistent shapes: batch=2, 16 points, input_dim = skip_dim
    # = 48 (e.g. a harmonic embedding), hidden_dim = 64, 4 layers, skip at 2.
    n_layers, input_dim, skip_dim, hidden_dim = 4, 48, 48, 64
    input_skips = (2,)

    keys = jax.random.split(key, 2 + 2 * n_layers)
    x = jax.random.normal(keys[0], (2, 16, input_dim), dtype=jnp.float32)
    z = jax.random.normal(keys[1], (2, 16, skip_dim), dtype=jnp.float32)

    params = []
    kidx = 2
    for li in range(n_layers):
        if li == 0:
            dimin = input_dim
        elif li in input_skips:
            dimin = hidden_dim + skip_dim
        else:
            dimin = hidden_dim
        scale = 1.0 / jnp.sqrt(jnp.float32(dimin))
        w_full = jax.random.normal(
            keys[kidx], (dimin, hidden_dim), dtype=jnp.float32) * scale
        b = jax.random.normal(
            keys[kidx + 1], (1, hidden_dim), dtype=jnp.float32) * 0.01
        kidx += 2
        if li in input_skips:
            # Split the skip-layer weight so the kernel avoids the concat.
            params.append((w_full[:hidden_dim], w_full[hidden_dim:], b))
        else:
            params.append((w_full, b))
    params = tuple(params)

    out = mlp_with_input_skips(x, z, params, input_skips=input_skips, tm=2048)
    out = jax.block_until_ready(out)

    ref = _reference(x, z, params, input_skips)
    assert out.shape == (2, 16, hidden_dim), out.shape
    # bf16 MXU operands (f32 accumulation) -> loosen tolerance vs f32 reference.
    assert jnp.allclose(out, ref, atol=5e-2, rtol=5e-2), float(
        jnp.max(jnp.abs(out - ref)))
    print("KERNEL_OK")
</pallas_src>

<mosaic_0001>
module attributes {stable_mosaic.version = 11 : i64} {
  func.func @kernel(%arg0: i32, %arg1: memref<8x48xf32, #tpu.memory_space<vmem>>, %arg2: memref<8x48xf32, #tpu.memory_space<vmem>>, %arg3: memref<48x128xbf16, #tpu.memory_space<vmem>>, %arg4: memref<1x128xf32, #tpu.memory_space<vmem>>, %arg5: memref<128x128xbf16, #tpu.memory_space<vmem>>, %arg6: memref<1x128xf32, #tpu.memory_space<vmem>>, %arg7: memref<128x128xbf16, #tpu.memory_space<vmem>>, %arg8: memref<48x128xbf16, #tpu.memory_space<vmem>>, %arg9: memref<1x128xf32, #tpu.memory_space<vmem>>, %arg10: memref<128x128xbf16, #tpu.memory_space<vmem>>, %arg11: memref<1x128xf32, #tpu.memory_space<vmem>>, %arg12: memref<8x128xf32, #tpu.memory_space<vmem>>) attributes {dimension_semantics = [#tpu.dimension_semantics<parallel>], iteration_bounds = array<i64: 4>, scalar_prefetch = 0 : i64, scratch_operands = 0 : i64, tpu.core_type = #tpu.core_type<tc>, window_params = [{transform_indices = @transform_0, window_bounds = array<i64: 8, 48>}, {transform_indices = @transform_1, window_bounds = array<i64: 8, 48>}, {pipeline_mode = #tpu.pipeline_mode<synchronous>, transform_indices = @transform_2, window_bounds = array<i64: 48, 128>}, {pipeline_mode = #tpu.pipeline_mode<synchronous>, transform_indices = @transform_3, window_bounds = array<i64: 1, 128>}, {pipeline_mode = #tpu.pipeline_mode<synchronous>, transform_indices = @transform_4, window_bounds = array<i64: 128, 128>}, {pipeline_mode = #tpu.pipeline_mode<synchronous>, transform_indices = @transform_5, window_bounds = array<i64: 1, 128>}, {pipeline_mode = #tpu.pipeline_mode<synchronous>, transform_indices = @transform_6, window_bounds = array<i64: 128, 128>}, {pipeline_mode = #tpu.pipeline_mode<synchronous>, transform_indices = @transform_7, window_bounds = array<i64: 48, 128>}, {pipeline_mode = #tpu.pipeline_mode<synchronous>, transform_indices = @transform_8, window_bounds = array<i64: 1, 128>}, {pipeline_mode = #tpu.pipeline_mode<synchronous>, transform_indices = @transform_9, window_bounds = array<i64: 128, 128>}, {pipeline_mode = #tpu.pipeline_mode<synchronous>, transform_indices = @transform_10, window_bounds = array<i64: 1, 128>}, {transform_indices = @transform_11, window_bounds = array<i64: 8, 128>}]} {
    %c0 = arith.constant 0 : index
    %c0_0 = arith.constant 0 : index
    %0 = vector.load %arg1[%c0, %c0_0] : memref<8x48xf32, #tpu.memory_space<vmem>>, vector<8x48xf32>
    %c0_1 = arith.constant 0 : index
    %c0_2 = arith.constant 0 : index
    %1 = vector.load %arg2[%c0_1, %c0_2] : memref<8x48xf32, #tpu.memory_space<vmem>>, vector<8x48xf32>
    %2 = arith.truncf %1 : vector<8x48xf32> to vector<8x48xbf16>
    %c0_3 = arith.constant 0 : index
    %c0_4 = arith.constant 0 : index
    %3 = vector.load %arg3[%c0_3, %c0_4] : memref<48x128xbf16, #tpu.memory_space<vmem>>, vector<48x128xbf16>
    %c0_5 = arith.constant 0 : index
    %c0_6 = arith.constant 0 : index
    %4 = vector.load %arg4[%c0_5, %c0_6] : memref<1x128xf32, #tpu.memory_space<vmem>>, vector<1x128xf32>
    %5 = arith.truncf %0 : vector<8x48xf32> to vector<8x48xbf16>
    %cst = arith.constant dense<0.000000e+00> : vector<8x128xf32>
    %6 = tpu.matmul %5, %3, %cst {dimension_numbers = #tpu.dot_dimension_numbers<[1], [0], [0], [1], [0, 0, 1, 1], [], []>} : vector<8x48xbf16>, vector<48x128xbf16>, vector<8x128xf32> -> vector<8x128xf32>
    %7 = vector.broadcast %4 : vector<1x128xf32> to vector<8x128xf32>
    %8 = arith.addf %6, %7 : vector<8x128xf32>
    %cst_7 = arith.constant 0.000000e+00 : f32
    %9 = vector.broadcast %cst_7 : f32 to vector<8x128xf32>
    %10 = arith.maximumf %8, %9 : vector<8x128xf32>
    %c0_8 = arith.constant 0 : index
    %c0_9 = arith.constant 0 : index
    %11 = vector.load %arg5[%c0_8, %c0_9] : memref<128x128xbf16, #tpu.memory_space<vmem>>, vector<128x128xbf16>
    %c0_10 = arith.constant 0 : index
    %c0_11 = arith.constant 0 : index
    %12 = vector.load %arg6[%c0_10, %c0_11] : memref<1x128xf32, #tpu.memory_space<vmem>>, vector<1x128xf32>
    %13 = arith.truncf %10 : vector<8x128xf32> to vector<8x128xbf16>
    %cst_12 = arith.constant dense<0.000000e+00> : vector<8x128xf32>
    %14 = tpu.matmul %13, %11, %cst_12 {dimension_numbers = #tpu.dot_dimension_numbers<[1], [0], [0], [1], [0, 0, 1, 1], [], []>} : vector<8x128xbf16>, vector<128x128xbf16>, vector<8x128xf32> -> vector<8x128xf32>
    %15 = vector.broadcast %12 : vector<1x128xf32> to vector<8x128xf32>
    %16 = arith.addf %14, %15 : vector<8x128xf32>
    %cst_13 = arith.constant 0.000000e+00 : f32
    %17 = vector.broadcast %cst_13 : f32 to vector<8x128xf32>
    %18 = arith.maximumf %16, %17 : vector<8x128xf32>
    %c0_14 = arith.constant 0 : index
    %c0_15 = arith.constant 0 : index
    %19 = vector.load %arg7[%c0_14, %c0_15] : memref<128x128xbf16, #tpu.memory_space<vmem>>, vector<128x128xbf16>
    %c0_16 = arith.constant 0 : index
    %c0_17 = arith.constant 0 : index
    %20 = vector.load %arg8[%c0_16, %c0_17] : memref<48x128xbf16, #tpu.memory_space<vmem>>, vector<48x128xbf16>
    %c0_18 = arith.constant 0 : index
    %c0_19 = arith.constant 0 : index
    %21 = vector.load %arg9[%c0_18, %c0_19] : memref<1x128xf32, #tpu.memory_space<vmem>>, vector<1x128xf32>
    %22 = arith.truncf %18 : vector<8x128xf32> to vector<8x128xbf16>
    %cst_20 = arith.constant dense<0.000000e+00> : vector<8x128xf32>
    %23 = tpu.matmul %22, %19, %cst_20 {dimension_numbers = #tpu.dot_dimension_numbers<[1], [0], [0], [1], [0, 0, 1, 1], [], []>} : vector<8x128xbf16>, vector<128x128xbf16>, vector<8x128xf32> -> vector<8x128xf32>
    %cst_21 = arith.constant dense<0.000000e+00> : vector<8x128xf32>
    %24 = tpu.matmul %2, %20, %cst_21 {dimension_numbers = #tpu.dot_dimension_numbers<[1], [0], [0], [1], [0, 0, 1, 1], [], []>} : vector<8x48xbf16>, vector<48x128xbf16>, vector<8x128xf32> -> vector<8x128xf32>
    %25 = arith.addf %23, %24 : vector<8x128xf32>
    %26 = vector.broadcast %21 : vector<1x128xf32> to vector<8x128xf32>
    %27 = arith.addf %25, %26 : vector<8x128xf32>
    %cst_22 = arith.constant 0.000000e+00 : f32
    %28 = vector.broadcast %cst_22 : f32 to vector<8x128xf32>
    %29 = arith.maximumf %27, %28 : vector<8x128xf32>
    %c0_23 = arith.constant 0 : index
    %c0_24 = arith.constant 0 : index
    %30 = vector.load %arg10[%c0_23, %c0_24] : memref<128x128xbf16, #tpu.memory_space<vmem>>, vector<128x128xbf16>
    %c0_25 = arith.constant 0 : index
    %c0_26 = arith.constant 0 : index
    %31 = vector.load %arg11[%c0_25, %c0_26] : memref<1x128xf32, #tpu.memory_space<vmem>>, vector<1x128xf32>
    %32 = arith.truncf %29 : vector<8x128xf32> to vector<8x128xbf16>
    %cst_27 = arith.constant dense<0.000000e+00> : vector<8x128xf32>
    %33 = tpu.matmul %32, %30, %cst_27 {dimension_numbers = #tpu.dot_dimension_numbers<[1], [0], [0], [1], [0, 0, 1, 1], [], []>} : vector<8x128xbf16>, vector<128x128xbf16>, vector<8x128xf32> -> vector<8x128xf32>
    %34 = vector.broadcast %31 : vector<1x128xf32> to vector<8x128xf32>
    %35 = arith.addf %33, %34 : vector<8x128xf32>
    %cst_28 = arith.constant 0.000000e+00 : f32
    %36 = vector.broadcast %cst_28 : f32 to vector<8x128xf32>
    %37 = arith.maximumf %35, %36 : vector<8x128xf32>
    %c0_29 = arith.constant 0 : index
    %c0_30 = arith.constant 0 : index
    %38 = vector.load %arg12[%c0_29, %c0_30] : memref<8x128xf32, #tpu.memory_space<vmem>>, vector<8x128xf32>
    tpu.vector_store %arg12[%c0_29, %c0_30], %37 {strides = array<i32>} : memref<8x128xf32, #tpu.memory_space<vmem>>, vector<8x128xf32>,
    return
  }
  func.func @transform_0(%arg0: i32) -> (i32, i32) {
    %c0_i32 = arith.constant 0 : i32
    %c0_i32_0 = arith.constant 0 : i32
    return %arg0, %c0_i32 : i32, i32
  }
  func.func @transform_1(%arg0: i32) -> (i32, i32) {
    %c0_i32 = arith.constant 0 : i32
    %c0_i32_0 = arith.constant 0 : i32
    return %arg0, %c0_i32 : i32, i32
  }
  func.func @transform_2(%arg0: i32) -> (i32, i32) {
    %c0_i32 = arith.constant 0 : i32
    %c0_i32_0 = arith.constant 0 : i32
    %c0_i32_1 = arith.constant 0 : i32
    return %c0_i32, %c0_i32_0 : i32, i32
  }
  func.func @transform_3(%arg0: i32) -> (i32, i32) {
    %c0_i32 = arith.constant 0 : i32
    %c0_i32_0 = arith.constant 0 : i32
    %c0_i32_1 = arith.constant 0 : i32
    return %c0_i32, %c0_i32_0 : i32, i32
  }
  func.func @transform_4(%arg0: i32) -> (i32, i32) {
    %c0_i32 = arith.constant 0 : i32
    %c0_i32_0 = arith.constant 0 : i32
    %c0_i32_1 = arith.constant 0 : i32
    return %c0_i32, %c0_i32_0 : i32, i32
  }
  func.func @transform_5(%arg0: i32) -> (i32, i32) {
    %c0_i32 = arith.constant 0 : i32
    %c0_i32_0 = arith.constant 0 : i32
    %c0_i32_1 = arith.constant 0 : i32
    return %c0_i32, %c0_i32_0 : i32, i32
  }
  func.func @transform_6(%arg0: i32) -> (i32, i32) {
    %c0_i32 = arith.constant 0 : i32
    %c0_i32_0 = arith.constant 0 : i32
    %c0_i32_1 = arith.constant 0 : i32
    return %c0_i32, %c0_i32_0 : i32, i32
  }
  func.func @transform_7(%arg0: i32) -> (i32, i32) {
    %c0_i32 = arith.constant 0 : i32
    %c0_i32_0 = arith.constant 0 : i32
    %c0_i32_1 = arith.constant 0 : i32
    return %c0_i32, %c0_i32_0 : i32, i32
  }
  func.func @transform_8(%arg0: i32) -> (i32, i32) {
    %c0_i32 = arith.constant 0 : i32
    %c0_i32_0 = arith.constant 0 : i32
    %c0_i32_1 = arith.constant 0 : i32
    return %c0_i32, %c0_i32_0 : i32, i32
  }
  func.func @transform_9(%arg0: i32) -> (i32, i32) {
    %c0_i32 = arith.constant 0 : i32
    %c0_i32_0 = arith.constant 0 : i32
    %c0_i32_1 = arith.constant 0 : i32
    return %c0_i32, %c0_i32_0 : i32, i32
  }
  func.func @transform_10(%arg0: i32) -> (i32, i32) {
    %c0_i32 = arith.constant 0 : i32
    %c0_i32_0 = arith.constant 0 : i32
    %c0_i32_1 = arith.constant 0 : i32
    return %c0_i32, %c0_i32_0 : i32, i32
  }
  func.func @transform_11(%arg0: i32) -> (i32, i32) {
    %c0_i32 = arith.constant 0 : i32
    %c0_i32_0 = arith.constant 0 : i32
    return %arg0, %c0_i32 : i32, i32
  }
}

</mosaic_0001>

<bundles_post_ra>
// kernel: mlp_with_input_skips.1
= control target key start
LH: loop header
LB: loop body
LE: loop exit
PB: predicated region body
PF: predicated region fallthrough
CT: control target
= control target key end

     0   :  { %s1353_s0 = inlined_call_operand.vmem [shape: f32[32,48], index: 0, kind: input, shape index: {}]   ;;  %s1354_s1 = inlined_call_operand.vmem [shape: f32[32,48], index: 1, kind: input, shape index: {}]   ;;  %s1355_s2 = inlined_call_operand.vmem [shape: bf16[48,128], index: 2, kind: input, shape index: {}]   ;;  %s1356_s3 = inlined_call_operand.vmem [shape: f32[1,128], index: 3, kind: input, shape index: {}]   ;;  %s1357_s4 = inlined_call_operand.vmem [shape: bf16[128,128], index: 4, kind: input, shape index: {}]   ;;  %s1358_s5 = inlined_call_operand.vmem [shape: f32[1,128], index: 5, kind: input, shape index: {}]   ;;  %s1359_s6 = inlined_call_operand.vmem [shape: bf16[128,128], index: 6, kind: input, shape index: {}]   ;;  %s1360_s7 = inlined_call_operand.vmem [shape: bf16[48,128], index: 7, kind: input, shape index: {}]   ;;  %s1361_s8 = inlined_call_operand.vmem [shape: f32[1,128], index: 8, kind: input, shape index: {}]   ;;  %s1362_s9 = inlined_call_operand.vmem [shape: bf16[128,128], index: 9, kind: input, shape index: {}]   ;;  %s1363_s10 = inlined_call_operand.vmem [shape: f32[1,128], index: 10, kind: input, shape index: {}]   ;;  %s1364_s11 = inlined_call_operand.hbm [shape: f32[32,128], index: 11, kind: output, shape index: {}]  }
   0x1   :  { %1365 = sst [smem:[#allocation6_spill]] %s1353_s0 }
   0x2   :  { %1366 = sst [smem:[#allocation7_spill]] %s1354_s1 }
   0x3   :  { %16 = vsyncpa [#allocation3], 0 }
   0x4   :  { %18 = vsyncpa [#allocation3 + $0x1], 0  ;;  %s1158_s17 = smov 0   ;;  %s1160_s18 = smov 0  }
   0x5   :  { %s1162_s19 = smov 0   ;;  %s1164_s20 = smov 0  }
   0x6 LB: > { %s1179_s21 = sadd.s32 4294967295, %s1096_s20   ;;  %s828_s22 = sadd.s32 4294967294, %s1096_s20   ;;  %s1096_s20 = sphi %s1164_s20, %s1376_s20   ;;  %s1092_s19 = sphi %s1162_s19, %s1375_s19   ;;  %s1088_s18 = sphi %s1160_s18, %s1374_s18   ;;  %s1084_s17 = sphi %s1158_s17, %s1373_s17  }
   0x7   : > { %s1183_s23 = sadd.s32 1, %s1096_s20   ;;  %s272_s24 = sadd.s32 1, %s1092_s19 }
   0x8   : > { %s269_s25 = ssub.s32 %s1096_s20, %s1183_s23  ;;  %p282_p0 = scmp.ne.s32.totalorder %s1092_s19, %s1088_s18 }
   0x9   : > { %p270_p1 = scmp.eq.s32.totalorder %s269_s25, 0  ;;  %p283_p2 = scmp.eq.s32.totalorder %s1179_s21, 3 }
   0xa   : > { %p288_p3 = scmp.ne.s32.totalorder %s1088_s18, %s1084_s17  ;;  %p289_p4 = scmp.eq.s32.totalorder %s828_s22, 3 }
   0xb   : > { %s1194_s26 = scalar_select %p270_p1, %s1092_s19, %s272_s24  }
   0xc   : > { %p1196_p5 = por %p283_p2, %p282_p0  ;;  %p1200_p6 = por %p289_p4, %p288_p3 }
   0xd   : > { %1367 = sst [smem:[#allocation5_spill]] %s1194_s26  ;;  %p831_p7 = scmp.ge.s32.totalorder %s1096_s20, 1 }
   0xe   : > { %p348_p8 = scmp.lt.s32.totalorder %s1096_s20, 5 }
  0x10   : > { %p349_p9 = pnand %p831_p7, %p348_p8 }
  0x11   : > { %p391_p10 = scmp.lt.s32.totalorder (!%p349_p9), %s1179_s21, 3  ;;  %s1370_s0 = sld [smem:[#allocation6_spill]] (!%p349_p9) }
  0x12   : > { %352 = sbr.rel (%p349_p9) target bundleno = 579 (0x243), region = 64  ;;  %s1371_s1 = sld [smem:[#allocation7_spill]] (!%p349_p9) }
  0x13   : > { %s958_s24 = sshll.u32 (!%p349_p9), %s1179_s21, 3 }
  0x14   : > { %s752_s12 = scalar_lea.hbm (!%p349_p9), %s1364_s11, %s958_s24  ;;  %s1054_s24 = scalar_lea.hbm (!%p349_p9), %s1364_s11, 32 }
  0x15   : > { %s756_s14 = sshll.u32 (!%p349_p9), %s752_s12, 4  ;;  %s757_s14 = int_to_ptr.hbm [resolvable:$true] %s756_s14 }
  0x17   : > { %v963_v0 = vld [vmem:[%s1355_s2 + $0x10] sm:$0xff]  ;;  %v971_v1 = vld [vmem:[%s1357_s4 + $0x38] sm:$0xff]  ;;  %v962_v2 = vld [vmem:[%s1355_s2 + $0x8] sm:$0xff]  ;;  %s1217_s16 = scalar_select %p391_p10, %s1179_s21, 3  ;;  %vm432_vm0 = vcmask 392192  }
  0x18   : > { %441 = vmatpush.bf16.msra.mxu2 %v963_v0  ;;  %519 = vmatpush.bf16.msra.mxu1 %v971_v1  ;;  %v970_v3 = vld [vmem:[%s1357_s4 + $0x30] sm:$0xff]  ;;  %v961_v4 = vld [vmem:[%s1355_s2] sm:$0xff]  ;;  %v969_v6 = vld [vmem:[%s1357_s4 + $0x28] sm:$0xff]  ;;  %s1048_s21 = sshra.s32 %s757_s14, 4  ;;  %s1049_s21 = int_to_ptr.hbm [resolvable:$true] %s1048_s21 }
  0x19   : > { %s833_s25 = sshll.u32 %s1217_s16, 3  ;;  %v968_v8 = vld [vmem:[%s1357_s4 + $0x20] sm:$0xff]  ;;  %v967_v9 = vld [vmem:[%s1357_s4 + $0x18] sm:$0xff]  ;;  %v966_v10 = vld [vmem:[%s1357_s4 + $0x10] sm:$0xff]  ;;  %s388_s16 = sand.u32 1, %s1088_s18  }
  0x1a   : > { %s394_s26 = scalar_lea.vmem %s1370_s0, %s833_s25  ;;  %v965_v11 = vld [vmem:[%s1357_s4 + $0x8] sm:$0xff]  ;;  %v964_v12 = vld [vmem:[%s1357_s4] sm:$0xff]  ;;  %v979_v13 = vld [vmem:[%s1359_s6 + $0x38] sm:$0xff]  ;;  %s398_s0 = scalar_lea.vmem %s1371_s1, %s833_s25 }
  0x1b   : > { %v400_v5 = vld [vmem:[%s394_s26] sm:$0xff]  ;;  %v982_v14 = vld [vmem:[%s1360_s7 + $0x10] sm:$0xff]  ;;  %639 = vmatpush.bf16.msra.mxu3 %v979_v13  ;;  %v981_v16 = vld [vmem:[%s1360_s7 + $0x8] sm:$0xff]  ;;  %s832_s22 = sshll.u32 %s388_s16, 3  ;;  %s742_s15 = scalar_lea.sflag [#allocation3], %s388_s16 }
  0x1c   : > { %442 = vmatpush.bf16.msra.mxu2 %v962_v2  ;;  %520 = vmatpush.bf16.msra.mxu1 %v970_v3  ;;  %v410_v7 = vpack.c.bf16 %v400_v5, %v400_v5  ;;  %v978_v15 = vld [vmem:[%s1359_s6 + $0x30] sm:$0xff]  ;;  %v977_v17 = vld [vmem:[%s1359_s6 + $0x28] sm:$0xff]  ;;  %v401_v18 = vld [vmem:[%s398_s0] sm:$0xff]  ;;  %s390_s0 = scalar_lea.vmem [#allocation2], %s832_s22  ;;  %s1050_s1 = scalar_lea.hbm %s1049_s21, 8 }
  0x1d   : > { %v980_v19 = vld [vmem:[%s1360_s7] sm:$0xff]  ;;  %v402_v20 = vpack.c.bf16 %v401_v18, %v401_v18  ;;  %v975_v22 = vld [vmem:[%s1359_s6 + $0x18] sm:$0xff]  ;;  %v974_v23 = vld [vmem:[%s1359_s6 + $0x10] sm:$0xff]  ;;  %s754_s13 = sshll.u32 %s390_s0, 4  ;;  %p1051_p11 = scmp.ne.s32.totalorder %s1049_s21, %s1050_s1  ;;  %s755_s13 = int_to_ptr.vmem [resolvable:$true] %s754_s13 }
  0x1e   : > { %v976_v21 = vld [vmem:[%s1359_s6 + $0x20] sm:$0xff]  ;;  %v973_v30 = vld [vmem:[%s1359_s6 + $0x8] sm:$0xff]  ;;  %v990_v32 = vld [vmem:[%s1362_s9 + $0x38] sm:$0xff]  ;;  %p1055_p0 = scmp.lt.s32.totalorder %s1049_s21, %s1364_s11  ;;  %p1056_p1 = scmp.lt.s32.totalorder %s1054_s24, %s1050_s1 }
  0x1f   : > { %640 = vmatpush.bf16.msra.mxu3 %v978_v15  ;;  %v1030_v24 = vld [vmem:[%s1356_s3] ss:$0 sm:$0xff]  ;;  %726 = vmatpush.bf16.msra.mxu0 %v990_v32  ;;  %v989_v33 = vld [vmem:[%s1362_s9 + $0x30] sm:$0xff]  ;;  %v988_v34 = vld [vmem:[%s1362_s9 + $0x28] sm:$0xff]  ;;  %p1052_p12 = pnand %p1051_p11, %p1196_p5 }
  0x20   : > { %443 = vmatpush.bf16.msra.mxu2 %v961_v4  ;;  %521 = vmatpush.bf16.msra.mxu1 %v969_v6  ;;  %v972_v31 = vld [vmem:[%s1359_s6] sm:$0xff]  ;;  %v986_v37 = vld [vmem:[%s1362_s9 + $0x18] sm:$0xff]  ;;  %v985_v38 = vld [vmem:[%s1362_s9 + $0x10] sm:$0xff]  ;;  %p1057_p2 = por %p1056_p1, %p1055_p0 }
  0x21   : > { %v987_v35 = vld [vmem:[%s1362_s9 + $0x20] sm:$0xff]  ;;  %v984_v46 = vld [vmem:[%s1362_s9 + $0x8] sm:$0xff]  ;;  %p1053_p13 = pneg %p1052_p12 }
  0x22   : > { %v1031_v39 = vld [vmem:[%s1358_s5] ss:$0 sm:$0xff] }
  0x23   : > { %847 = vmatmul.msk.bf16.vlgmr.msra.gmra.mxu2 %vm432_vm0, %v410_v7  ;;  %641 = vmatpush.bf16.msra.mxu3 %v977_v17  ;;  %v983_v47 = vld [vmem:[%s1362_s9] sm:$0xff]  ;;  %p1058_p3 = pnand %p1057_p2, %p1053_p13 }
  0x24   : > { %522 = vmatpush.bf16.msra.mxu1 %v968_v8  ;;  %583 = vmatpush.bf16.msrb.mxu2 %v982_v14  ;;  %v1032_v48 = vld [vmem:[%s1361_s8] ss:$0 sm:$0xff] }
  0x25   : > { %727 = vmatpush.bf16.msra.mxu0 %v989_v33  ;;  %v1033_v55 = vld [vmem:[%s1363_s10] ss:$0 sm:$0xff] }
  0x27   : > { %642 = vmatpush.bf16.msra.mxu3 %v976_v21 }
  0x28   : > { %523 = vmatpush.bf16.msra.mxu1 %v967_v9  ;;  %584 = vmatpush.bf16.msrb.mxu2 %v981_v16 }
  0x29   : > { %728 = vmatpush.bf16.msra.mxu0 %v988_v34 }
  0x2b   : > { %643 = vmatpush.bf16.msra.mxu3 %v975_v22 }
  0x2c   : > { %524 = vmatpush.bf16.msra.mxu1 %v966_v10  ;;  %585 = vmatpush.bf16.msrb.mxu2 %v980_v19 }
  0x2d   : > { %729 = vmatpush.bf16.msra.mxu0 %v987_v35 }
  0x2f   : > { %644 = vmatpush.bf16.msra.mxu3 %v974_v23 }
  0x30   : > { %525 = vmatpush.bf16.msra.mxu1 %v965_v11 }
  0x31   : > { %730 = vmatpush.bf16.msra.mxu0 %v986_v37 }
  0x33   : > { %892 = vmatmul.msk.bf16.vlgmr.msrb.gmra.mxu2 %vm432_vm0, %v402_v20  ;;  %645 = vmatpush.bf16.msra.mxu3 %v973_v30 }
  0x34   : > { %526 = vmatpush.bf16.msra.mxu1 %v964_v12 }
  0x35   : > { %731 = vmatpush.bf16.msra.mxu0 %v985_v38 }
  0x37   : > { %646 = vmatpush.bf16.msra.mxu3 %v972_v31 }
  0x39   : > { %732 = vmatpush.bf16.msra.mxu0 %v984_v46 }
  0x3d   : > { %733 = vmatpush.bf16.msra.mxu0 %v983_v47 }
  0xa6   : > { %v445_v25 = vpop.f32.mrf.mxu2 }
  0xa7   : > { %v446_v26 = vadd.f32 %v1030_v24, %v445_v25 }
  0xa9   : > { %v449_v27 = vmax.f32 %v446_v26, 0.0 }
  0xab   : > { %v467_v28 = vpack.c.bf16 %v449_v27, %v449_v27 }
  0xad   : > { %527 = vmatmul.bf16.vlgmr.msra.gmra.mxu1 %v467_v28 }
  0xae   : > { %v447_v29 = vpop.f32.mrf.mxu2 }
  0xb6   : > { %v587_v36 = vpop.f32.mrf.mxu2 }
  0xbe   : > { %v589_v40 = vpop.f32.mrf.mxu2 }
 0x12a   : > { %v528_v41 = vpop.f32.mrf.mxu1 }
 0x12b   : > { %v529_v42 = vadd.f32 %v1031_v39, %v528_v41 }
 0x12d   : > { %v532_v43 = vmax.f32 %v529_v42, 0.0 }
 0x12f   : > { %v556_v44 = vpack.c.bf16 %v532_v43, %v532_v43 }
 0x131   : > { %647 = vmatmul.bf16.vlgmr.msra.gmra.mxu3 %v556_v44 }
 0x132   : > { %v530_v45 = vpop.f32.mrf.mxu1 }
 0x1b4   : > { %v648_v49 = vpop.f32.mrf.mxu3 }
 0x1b5   : > { %v649_v50 = vadd.f32 %v648_v49, %v587_v36 }
 0x1b7   : > { %v655_v51 = vadd.f32 %v1032_v48, %v649_v50 }
 0x1b9   : > { %v656_v52 = vmax.f32 %v655_v51, 0.0 }
 0x1bb   : > { %v674_v53 = vpack.c.bf16 %v656_v52, %v656_v52 }
 0x1bc   : > { %v650_v54 = vpop.f32.mrf.mxu3 }
 0x1bd   : > { %734 = vmatmul.bf16.vlgmr.msra.gmra.mxu0 %v674_v53 }
 0x23a   : > { %v735_v56 = vpop.f32.mrf.mxu0 }
 0x23b   : > { %v736_v57 = vadd.f32 %v1033_v55, %v735_v56 }
 0x23d   : > { %v739_v58 = vmax.f32 %v736_v57, 0.0 }
 0x23f   : > { %740 = vst [vmem:[%s390_s0] sm:$0xff] %v739_v58 }
 0x240   : > { %1061 = shalt.err (!%p1058_p3)
}
 0x241   : > { %991 = dma.vmem_to_hbm [thread:$0]  (%p1196_p5), %s755_s13, 128, %s757_s14, %s742_s15  }
 0x242   : > { %v737_v59 = vpop.f32.mrf.mxu0 }
 0x243 PF: > { %p997_p4 = scmp.ge.s32.totalorder %s1096_s20, 2  ;;  %s768_s16 = sand.u32 1, %s1084_s17  }
 0x244   : > { %s769_s25 = scalar_lea.sflag [#allocation3], %s768_s16 }
 0x245   : > { %p994_p7 = pnand %p997_p4, %p1200_p6 }
 0x247   : > { %p995_p8 = pneg %p994_p7 }
 0x249   : > { %1079 = dma.done.wait (%p995_p8), %s769_s25, 128  }
 0x24a   : > { %1081 = vsyncadd (%p995_p8), %s769_s25, 4294967168  ;;  %s1372_s1 = sld [smem:[#allocation5_spill]]  ;;  %p21_p9 = scmp.ge.s32.totalorder %s1183_s23, 6  }
 0x24b   : > { %s1373_s17 = smov %s1088_s18  ;;  %s1374_s18 = smov %s1092_s19 }
 0x24c   : > { %s1376_s20 = smov %s1183_s23  ;;  %23 = sbr.rel (!%p21_p9) target bundleno = 6 (0x6), region = 102 }
 0x250   : > { %s1375_s19 = smov %s1372_s1 }
 0x251   :  { %775 = vsyncpa [#allocation3], 1 }
 0x252   :  { %777 = vsyncpa [#allocation3 + $0x1], 1 }

</bundles_post_ra>
